<compile_context>
chip_gen: v7x
topology: tpu7x:2x2x1
jax: 0.10.0
libtpu: 0.0.40
codegen_flags: <defaults>
</compile_context>

<pallas_src>
import jax
import jax.numpy as jnp
from jax.experimental import pallas as pl
from jax.experimental.pallas import tpu as pltpu


def _round_up(x: int, m: int) -> int:
    return ((x + m - 1) // m) * m


def _make_beta_projection_kernel(num_extra_hidden: int, base_add: float,
                                 min_val: float, max_val: float):
    """Builds the fused kernel.

    Ref order: alpha, beta, mask, w1a, w1b, b1, [w_l, b_l]*, w0, b0, out.
    All weights are pre-transposed to (in, out) layout by the wrapper.
    """

    def kernel(alpha_ref, beta_ref, mask_ref, *rest):
        out_ref = rest[-1]
        w1a_ref, w1b_ref, b1_ref = rest[0], rest[1], rest[2]

        m = mask_ref[...]                       # (tr, 1)
        a = alpha_ref[...] * m                  # (tr, E)
        b = beta_ref[...] * m                   # (tr, E)

        # layer1: concat(a, b) @ W1  ==  a @ W1[:E] + b @ W1[E:]
        h = jnp.dot(a, w1a_ref[...], preferred_element_type=jnp.float32)
        h = h + jnp.dot(b, w1b_ref[...], preferred_element_type=jnp.float32)
        h = jnp.maximum(h + b1_ref[...], 0.0)

        idx = 3
        for _ in range(num_extra_hidden):
            w_ref, b_ref = rest[idx], rest[idx + 1]
            idx += 2
            h = jnp.dot(h, w_ref[...], preferred_element_type=jnp.float32)
            h = jnp.maximum(h + b_ref[...], 0.0)

        w0_ref, b0_ref = rest[idx], rest[idx + 1]
        y = jnp.dot(h, w0_ref[...], preferred_element_type=jnp.float32)
        y = y + b0_ref[...]

        # projection_regularizer: the standard BetaE regularizer clamp(x + 1, 0.05, 1e9).
        # TODO(synk): PyTorch passes an arbitrary callable; only the standard clamp
        # regularizer (parameterized via base_add/min_val/max_val) is implemented here.
        y = jnp.clip(y + base_add, min_val, max_val)
        out_ref[...] = y.astype(out_ref.dtype)

    return kernel


def beta_projection(seq_alpha, seq_beta, mask, hidden_layers, final_layer, *,
                    base_add=1.0, min_val=0.05, max_val=1e9):
    """Pallas equivalent of BetaProjection.forward.

    seq_alpha, seq_beta : (B, S, E)
    mask                : (B, S)
    hidden_layers       : [(W1, b1), (W2, b2), ...] PyTorch-layout weights (out, in);
                          W1 has in_features == 2*E  (== max_len * dim * 2).
    final_layer         : (W0, b0)  -- "layer0".
    """
    B, S, E = seq_alpha.shape
    assert seq_beta.shape == (B, S, E)
    assert mask.shape == (B, S)

    w1, b1 = hidden_layers[0]
    dim = int(w1.shape[0])
    assert int(w1.shape[1]) == 2 * E, "layer1 in_features must equal 2*E"

    f32 = jnp.float32
    alpha2d = seq_alpha.astype(f32).reshape(B * S, E)
    beta2d = seq_beta.astype(f32).reshape(B * S, E)
    mask2d = mask.astype(f32).reshape(B * S, 1)

    # (in, out) layout; split layer1 so the concat never materializes.
    w1t = jnp.asarray(w1, f32).T                     # (2E, dim)
    w1a, w1b = w1t[:E], w1t[E:]
    b1r = jnp.asarray(b1, f32).reshape(1, dim)
    extra = [(jnp.asarray(w, f32).T, jnp.asarray(b, f32).reshape(1, -1))
             for (w, b) in hidden_layers[1:]]
    w0, b0 = final_layer
    w0t = jnp.asarray(w0, f32).T
    b0r = jnp.asarray(b0, f32).reshape(1, dim)

    N = B * S

    # ---- byte-budgeted, 8-aligned row tile (streaming / mem-bound sizing) ----
    bytes_per_row = (2 * E + 1 + dim) * 4            # alpha + beta + mask + out
    budget = 2 * 1024 * 1024                          # ~2 MiB streamed per grid step
    tr = max(8, min(2048, (budget // bytes_per_row) // 8 * 8))
    if N > 8:
        # keep >= 2 grid steps so v7x's two TensorCores both get work
        tr = min(tr, _round_up(_round_up(N, 8) // 2, 8))
    tr = max(tr, 8)

    N_pad = _round_up(N, tr)
    if N_pad != N:
        pad = N_pad - N
        alpha2d = jnp.pad(alpha2d, ((0, pad), (0, 0)))
        beta2d = jnp.pad(beta2d, ((0, pad), (0, 0)))
        mask2d = jnp.pad(mask2d, ((0, pad), (0, 0)))   # mask=0 -> padded rows inert
    grid = (N_pad // tr,)

    kernel = _make_beta_projection_kernel(len(extra), float(base_add),
                                          float(min_val), float(max_val))

    def row_spec(shp):
        return pl.BlockSpec(shp, lambda i: (i, 0))

    def full_spec(arr):
        return pl.BlockSpec(arr.shape, lambda i: (0, 0))

    inputs = [alpha2d, beta2d, mask2d, w1a, w1b, b1r]
    in_specs = [row_spec((tr, E)), row_spec((tr, E)), row_spec((tr, 1)),
                full_spec(w1a), full_spec(w1b), full_spec(b1r)]
    for (w, b) in extra:
        inputs += [w, b]
        in_specs += [full_spec(w), full_spec(b)]
    inputs += [w0t, b0r]
    in_specs += [full_spec(w0t), full_spec(b0r)]

    weight_bytes = sum(int(a.size) * 4 for a in inputs[3:])
    flops = 2 * N * (2 * E) * dim + 2 * N * dim * dim * (len(extra) + 1)
    bytes_accessed = 4 * N * (2 * E + 1 + dim) + weight_bytes

    out = pl.pallas_call(
        kernel,
        out_shape=jax.ShapeDtypeStruct((N_pad, dim), f32),
        grid_spec=pltpu.PrefetchScalarGridSpec(
            num_scalar_prefetch=0,
            grid=grid,
            in_specs=in_specs,
            out_specs=row_spec((tr, dim)),
        ),
        compiler_params=pltpu.CompilerParams(
            dimension_semantics=("parallel",),
            vmem_limit_bytes=32 * 1024 * 1024,   # safe on v5e/v6e/v7x; blocks << limit
        ),
        cost_estimate=pl.CostEstimate(
            flops=flops, transcendentals=0, bytes_accessed=bytes_accessed),
    )(*inputs)

    return out[:N].reshape(B, S, dim)


if __name__ == "__main__":
    key = jax.random.PRNGKey(0)
    # Small shapes consistent with the module: dim=32, max_len=1 so
    # layer1 in_features = max_len*dim*2 = 2*E, B=2, S=8, num_layers=3
    # (layer1, layer2, layer3 hidden + layer0 final, as in the PyTorch module).
    B, S, dim = 2, 8, 32
    E = dim  # max_len * dim with max_len = 1

    ks = jax.random.split(key, 11)
    seq_alpha = jax.random.uniform(ks[0], (B, S, E), jnp.float32, minval=0.05, maxval=1.0)
    seq_beta = jax.random.uniform(ks[1], (B, S, E), jnp.float32, minval=0.05, maxval=1.0)
    mask = (jax.random.uniform(ks[2], (B, S)) > 0.25).astype(jnp.float32)

    def xavier(k, shape):
        fan_out, fan_in = shape
        lim = (6.0 / (fan_in + fan_out)) ** 0.5
        return jax.random.uniform(k, shape, jnp.float32, minval=-lim, maxval=lim)

    w1 = xavier(ks[3], (dim, 2 * E)); b1 = 0.01 * jax.random.normal(ks[4], (dim,), jnp.float32)
    w2 = xavier(ks[5], (dim, dim));   b2 = 0.01 * jax.random.normal(ks[6], (dim,), jnp.float32)
    w3 = xavier(ks[7], (dim, dim));   b3 = 0.01 * jax.random.normal(ks[8], (dim,), jnp.float32)
    w0 = xavier(ks[9], (dim, dim));   b0 = 0.01 * jax.random.normal(ks[10], (dim,), jnp.float32)

    hidden = [(w1, b1), (w2, b2), (w3, b3)]
    final = (w0, b0)

    out = beta_projection(seq_alpha, seq_beta, mask, hidden, final)
    out = jax.block_until_ready(out)

    # Pure-JAX reference matching the PyTorch forward (with the standard BetaE
    # clamp(x + 1, 0.05, 1e9) projection_regularizer).
    x = jnp.concatenate([seq_alpha, seq_beta], axis=-1) * mask[..., None]
    x = jnp.maximum(jnp.einsum("bse,de->bsd", x, w1) + b1, 0.0)
    x = jnp.maximum(jnp.einsum("bse,de->bsd", x, w2) + b2, 0.0)
    x = jnp.maximum(jnp.einsum("bse,de->bsd", x, w3) + b3, 0.0)
    x = jnp.einsum("bse,de->bsd", x, w0) + b0
    ref = jnp.clip(x + 1.0, 0.05, 1e9)

    assert out.shape == (B, S, dim)
    assert out.dtype == jnp.float32
    max_err = float(jnp.max(jnp.abs(out - ref)))
    assert jnp.allclose(out, ref, rtol=1e-3, atol=1e-3), f"max abs err = {max_err}"

    print("KERNEL_OK")
</pallas_src>

<mosaic_0001>
module attributes {stable_mosaic.version = 11 : i64} {
  func.func @kernel(%arg0: i32, %arg1: memref<8x32xf32, #tpu.memory_space<vmem>>, %arg2: memref<8x32xf32, #tpu.memory_space<vmem>>, %arg3: memref<8x1xf32, #tpu.memory_space<vmem>>, %arg4: memref<32x32xf32, #tpu.memory_space<vmem>>, %arg5: memref<32x32xf32, #tpu.memory_space<vmem>>, %arg6: memref<1x32xf32, #tpu.memory_space<vmem>>, %arg7: memref<32x32xf32, #tpu.memory_space<vmem>>, %arg8: memref<1x32xf32, #tpu.memory_space<vmem>>, %arg9: memref<32x32xf32, #tpu.memory_space<vmem>>, %arg10: memref<1x32xf32, #tpu.memory_space<vmem>>, %arg11: memref<32x32xf32, #tpu.memory_space<vmem>>, %arg12: memref<1x32xf32, #tpu.memory_space<vmem>>, %arg13: memref<8x32xf32, #tpu.memory_space<vmem>>) attributes {dimension_semantics = [#tpu.dimension_semantics<parallel>], iteration_bounds = array<i64: 2>, scalar_prefetch = 0 : i64, scratch_operands = 0 : i64, tpu.core_type = #tpu.core_type<tc>, window_params = [{transform_indices = @transform_0, window_bounds = array<i64: 8, 32>}, {transform_indices = @transform_1, window_bounds = array<i64: 8, 32>}, {transform_indices = @transform_2, window_bounds = array<i64: 8, 1>}, {pipeline_mode = #tpu.pipeline_mode<synchronous>, transform_indices = @transform_3, window_bounds = array<i64: 32, 32>}, {pipeline_mode = #tpu.pipeline_mode<synchronous>, transform_indices = @transform_4, window_bounds = array<i64: 32, 32>}, {pipeline_mode = #tpu.pipeline_mode<synchronous>, transform_indices = @transform_5, window_bounds = array<i64: 1, 32>}, {pipeline_mode = #tpu.pipeline_mode<synchronous>, transform_indices = @transform_6, window_bounds = array<i64: 32, 32>}, {pipeline_mode = #tpu.pipeline_mode<synchronous>, transform_indices = @transform_7, window_bounds = array<i64: 1, 32>}, {pipeline_mode = #tpu.pipeline_mode<synchronous>, transform_indices = @transform_8, window_bounds = array<i64: 32, 32>}, {pipeline_mode = #tpu.pipeline_mode<synchronous>, transform_indices = @transform_9, window_bounds = array<i64: 1, 32>}, {pipeline_mode = #tpu.pipeline_mode<synchronous>, transform_indices = @transform_10, window_bounds = array<i64: 32, 32>}, {pipeline_mode = #tpu.pipeline_mode<synchronous>, transform_indices = @transform_11, window_bounds = array<i64: 1, 32>}, {transform_indices = @transform_12, window_bounds = array<i64: 8, 32>}]} {
    %c0 = arith.constant 0 : index
    %c0_0 = arith.constant 0 : index
    %0 = vector.load %arg3[%c0, %c0_0] : memref<8x1xf32, #tpu.memory_space<vmem>>, vector<8x1xf32>
    %c0_1 = arith.constant 0 : index
    %c0_2 = arith.constant 0 : index
    %1 = vector.load %arg1[%c0_1, %c0_2] : memref<8x32xf32, #tpu.memory_space<vmem>>, vector<8x32xf32>
    %2 = vector.broadcast %0 : vector<8x1xf32> to vector<8x32xf32>
    %3 = arith.mulf %1, %2 : vector<8x32xf32>
    %c0_3 = arith.constant 0 : index
    %c0_4 = arith.constant 0 : index
    %4 = vector.load %arg2[%c0_3, %c0_4] : memref<8x32xf32, #tpu.memory_space<vmem>>, vector<8x32xf32>
    %5 = vector.broadcast %0 : vector<8x1xf32> to vector<8x32xf32>
    %6 = arith.mulf %4, %5 : vector<8x32xf32>
    %c0_5 = arith.constant 0 : index
    %c0_6 = arith.constant 0 : index
    %7 = vector.load %arg4[%c0_5, %c0_6] : memref<32x32xf32, #tpu.memory_space<vmem>>, vector<32x32xf32>
    %cst = arith.constant dense<0.000000e+00> : vector<8x32xf32>
    %8 = tpu.matmul %3, %7, %cst {dimension_numbers = #tpu.dot_dimension_numbers<[1], [0], [0], [1], [0, 0, 1, 1], [], []>} : vector<8x32xf32>, vector<32x32xf32>, vector<8x32xf32> -> vector<8x32xf32>
    %c0_7 = arith.constant 0 : index
    %c0_8 = arith.constant 0 : index
    %9 = vector.load %arg5[%c0_7, %c0_8] : memref<32x32xf32, #tpu.memory_space<vmem>>, vector<32x32xf32>
    %cst_9 = arith.constant dense<0.000000e+00> : vector<8x32xf32>
    %10 = tpu.matmul %6, %9, %cst_9 {dimension_numbers = #tpu.dot_dimension_numbers<[1], [0], [0], [1], [0, 0, 1, 1], [], []>} : vector<8x32xf32>, vector<32x32xf32>, vector<8x32xf32> -> vector<8x32xf32>
    %11 = arith.addf %8, %10 : vector<8x32xf32>
    %c0_10 = arith.constant 0 : index
    %c0_11 = arith.constant 0 : index
    %12 = vector.load %arg6[%c0_10, %c0_11] : memref<1x32xf32, #tpu.memory_space<vmem>>, vector<1x32xf32>
    %13 = vector.broadcast %12 : vector<1x32xf32> to vector<8x32xf32>
    %14 = arith.addf %11, %13 : vector<8x32xf32>
    %cst_12 = arith.constant 0.000000e+00 : f32
    %15 = vector.broadcast %cst_12 : f32 to vector<8x32xf32>
    %16 = arith.maximumf %14, %15 : vector<8x32xf32>
    %c0_13 = arith.constant 0 : index
    %c0_14 = arith.constant 0 : index
    %17 = vector.load %arg7[%c0_13, %c0_14] : memref<32x32xf32, #tpu.memory_space<vmem>>, vector<32x32xf32>
    %cst_15 = arith.constant dense<0.000000e+00> : vector<8x32xf32>
    %18 = tpu.matmul %16, %17, %cst_15 {dimension_numbers = #tpu.dot_dimension_numbers<[1], [0], [0], [1], [0, 0, 1, 1], [], []>} : vector<8x32xf32>, vector<32x32xf32>, vector<8x32xf32> -> vector<8x32xf32>
    %c0_16 = arith.constant 0 : index
    %c0_17 = arith.constant 0 : index
    %19 = vector.load %arg8[%c0_16, %c0_17] : memref<1x32xf32, #tpu.memory_space<vmem>>, vector<1x32xf32>
    %20 = vector.broadcast %19 : vector<1x32xf32> to vector<8x32xf32>
    %21 = arith.addf %18, %20 : vector<8x32xf32>
    %cst_18 = arith.constant 0.000000e+00 : f32
    %22 = vector.broadcast %cst_18 : f32 to vector<8x32xf32>
    %23 = arith.maximumf %21, %22 : vector<8x32xf32>
    %c0_19 = arith.constant 0 : index
    %c0_20 = arith.constant 0 : index
    %24 = vector.load %arg9[%c0_19, %c0_20] : memref<32x32xf32, #tpu.memory_space<vmem>>, vector<32x32xf32>
    %cst_21 = arith.constant dense<0.000000e+00> : vector<8x32xf32>
    %25 = tpu.matmul %23, %24, %cst_21 {dimension_numbers = #tpu.dot_dimension_numbers<[1], [0], [0], [1], [0, 0, 1, 1], [], []>} : vector<8x32xf32>, vector<32x32xf32>, vector<8x32xf32> -> vector<8x32xf32>
    %c0_22 = arith.constant 0 : index
    %c0_23 = arith.constant 0 : index
    %26 = vector.load %arg10[%c0_22, %c0_23] : memref<1x32xf32, #tpu.memory_space<vmem>>, vector<1x32xf32>
    %27 = vector.broadcast %26 : vector<1x32xf32> to vector<8x32xf32>
    %28 = arith.addf %25, %27 : vector<8x32xf32>
    %cst_24 = arith.constant 0.000000e+00 : f32
    %29 = vector.broadcast %cst_24 : f32 to vector<8x32xf32>
    %30 = arith.maximumf %28, %29 : vector<8x32xf32>
    %c0_25 = arith.constant 0 : index
    %c0_26 = arith.constant 0 : index
    %31 = vector.load %arg11[%c0_25, %c0_26] : memref<32x32xf32, #tpu.memory_space<vmem>>, vector<32x32xf32>
    %cst_27 = arith.constant dense<0.000000e+00> : vector<8x32xf32>
    %32 = tpu.matmul %30, %31, %cst_27 {dimension_numbers = #tpu.dot_dimension_numbers<[1], [0], [0], [1], [0, 0, 1, 1], [], []>} : vector<8x32xf32>, vector<32x32xf32>, vector<8x32xf32> -> vector<8x32xf32>
    %c0_28 = arith.constant 0 : index
    %c0_29 = arith.constant 0 : index
    %33 = vector.load %arg12[%c0_28, %c0_29] : memref<1x32xf32, #tpu.memory_space<vmem>>, vector<1x32xf32>
    %34 = vector.broadcast %33 : vector<1x32xf32> to vector<8x32xf32>
    %35 = arith.addf %32, %34 : vector<8x32xf32>
    %cst_30 = arith.constant 1.000000e+00 : f32
    %36 = vector.broadcast %cst_30 : f32 to vector<8x32xf32>
    %37 = arith.addf %35, %36 : vector<8x32xf32>
    %cst_31 = arith.constant 5.000000e-02 : f32
    %cst_32 = arith.constant 1.000000e+09 : f32
    %38 = vector.broadcast %cst_31 : f32 to vector<8x32xf32>
    %39 = arith.maximumf %38, %37 : vector<8x32xf32>
    %40 = vector.broadcast %cst_32 : f32 to vector<8x32xf32>
    %41 = arith.minimumf %40, %39 : vector<8x32xf32>
    %c0_33 = arith.constant 0 : index
    %c0_34 = arith.constant 0 : index
    %42 = vector.load %arg13[%c0_33, %c0_34] : memref<8x32xf32, #tpu.memory_space<vmem>>, vector<8x32xf32>
    tpu.vector_store %arg13[%c0_33, %c0_34], %41 {strides = array<i32>} : memref<8x32xf32, #tpu.memory_space<vmem>>, vector<8x32xf32>,
    return
  }
  func.func @transform_0(%arg0: i32) -> (i32, i32) {
    %c0_i32 = arith.constant 0 : i32
    %c0_i32_0 = arith.constant 0 : i32
    return %arg0, %c0_i32 : i32, i32
  }
  func.func @transform_1(%arg0: i32) -> (i32, i32) {
    %c0_i32 = arith.constant 0 : i32
    %c0_i32_0 = arith.constant 0 : i32
    return %arg0, %c0_i32 : i32, i32
  }
  func.func @transform_2(%arg0: i32) -> (i32, i32) {
    %c0_i32 = arith.constant 0 : i32
    %c0_i32_0 = arith.constant 0 : i32
    return %arg0, %c0_i32 : i32, i32
  }
  func.func @transform_3(%arg0: i32) -> (i32, i32) {
    %c0_i32 = arith.constant 0 : i32
    %c0_i32_0 = arith.constant 0 : i32
    %c0_i32_1 = arith.constant 0 : i32
    return %c0_i32, %c0_i32_0 : i32, i32
  }
  func.func @transform_4(%arg0: i32) -> (i32, i32) {
    %c0_i32 = arith.constant 0 : i32
    %c0_i32_0 = arith.constant 0 : i32
    %c0_i32_1 = arith.constant 0 : i32
    return %c0_i32, %c0_i32_0 : i32, i32
  }
  func.func @transform_5(%arg0: i32) -> (i32, i32) {
    %c0_i32 = arith.constant 0 : i32
    %c0_i32_0 = arith.constant 0 : i32
    %c0_i32_1 = arith.constant 0 : i32
    return %c0_i32, %c0_i32_0 : i32, i32
  }
  func.func @transform_6(%arg0: i32) -> (i32, i32) {
    %c0_i32 = arith.constant 0 : i32
    %c0_i32_0 = arith.constant 0 : i32
    %c0_i32_1 = arith.constant 0 : i32
    return %c0_i32, %c0_i32_0 : i32, i32
  }
  func.func @transform_7(%arg0: i32) -> (i32, i32) {
    %c0_i32 = arith.constant 0 : i32
    %c0_i32_0 = arith.constant 0 : i32
    %c0_i32_1 = arith.constant 0 : i32
    return %c0_i32, %c0_i32_0 : i32, i32
  }
  func.func @transform_8(%arg0: i32) -> (i32, i32) {
    %c0_i32 = arith.constant 0 : i32
    %c0_i32_0 = arith.constant 0 : i32
    %c0_i32_1 = arith.constant 0 : i32
    return %c0_i32, %c0_i32_0 : i32, i32
  }
  func.func @transform_9(%arg0: i32) -> (i32, i32) {
    %c0_i32 = arith.constant 0 : i32
    %c0_i32_0 = arith.constant 0 : i32
    %c0_i32_1 = arith.constant 0 : i32
    return %c0_i32, %c0_i32_0 : i32, i32
  }
  func.func @transform_10(%arg0: i32) -> (i32, i32) {
    %c0_i32 = arith.constant 0 : i32
    %c0_i32_0 = arith.constant 0 : i32
    %c0_i32_1 = arith.constant 0 : i32
    return %c0_i32, %c0_i32_0 : i32, i32
  }
  func.func @transform_11(%arg0: i32) -> (i32, i32) {
    %c0_i32 = arith.constant 0 : i32
    %c0_i32_0 = arith.constant 0 : i32
    %c0_i32_1 = arith.constant 0 : i32
    return %c0_i32, %c0_i32_0 : i32, i32
  }
  func.func @transform_12(%arg0: i32) -> (i32, i32) {
    %c0_i32 = arith.constant 0 : i32
    %c0_i32_0 = arith.constant 0 : i32
    return %arg0, %c0_i32 : i32, i32
  }
}

</mosaic_0001>

<bundles_post_ra>
// kernel: tpu_custom_call.1
= control target key start
LH: loop header
LB: loop body
LE: loop exit
PB: predicated region body
PF: predicated region fallthrough
CT: control target
= control target key end

     0   :  { %s2097_s0 = inlined_call_operand.hbm [shape: f32[16,32], index: 0, kind: input, shape index: {}]   ;;  %s2098_s1 = inlined_call_operand.hbm [shape: f32[16,32], index: 1, kind: input, shape index: {}]   ;;  %s2099_s2 = inlined_call_operand.vmem [shape: f32[16,1], index: 2, kind: input, shape index: {}]   ;;  %s2100_s3 = inlined_call_operand.hbm [shape: f32[32,32], index: 3, kind: input, shape index: {}]   ;;  %s2101_s4 = inlined_call_operand.vmem [shape: f32[32,32], index: 4, kind: input, shape index: {}]   ;;  %s2102_s5 = inlined_call_operand.vmem [shape: f32[1,32], index: 5, kind: input, shape index: {}]   ;;  %s2103_s6 = inlined_call_operand.hbm [shape: f32[32,32], index: 6, kind: input, shape index: {}]   ;;  %s2104_s7 = inlined_call_operand.vmem [shape: f32[1,32], index: 7, kind: input, shape index: {}]   ;;  %s2105_s8 = inlined_call_operand.hbm [shape: f32[32,32], index: 8, kind: input, shape index: {}]   ;;  %s2106_s9 = inlined_call_operand.vmem [shape: f32[1,32], index: 9, kind: input, shape index: {}]   ;;  %s2107_s10 = inlined_call_operand.hbm [shape: f32[32,32], index: 10, kind: input, shape index: {}]   ;;  %s2108_s11 = inlined_call_operand.vmem [shape: f32[1,32], index: 11, kind: input, shape index: {}]   ;;  %s2109_s12 = inlined_call_operand.hbm [shape: f32[16,32], index: 12, kind: output, shape index: {}]  }
   0x1   :  { %2115 = sst [smem:[#allocation21_spill]] %s2100_s3 }
   0x2   :  { %2116 = sst [smem:[#allocation22_spill]] %s2103_s6 }
   0x3   :  { %2117 = sst [smem:[#allocation23_spill]] %s2104_s7 }
   0x4   :  { %2118 = sst [smem:[#allocation24_spill]] %s2105_s8 }
   0x5   :  { %2119 = sst [smem:[#allocation25_spill]] %s2106_s9 }
   0x6   :  { %2120 = sst [smem:[#allocation26_spill]] %s2107_s10 }
   0x7   :  { %2121 = sst [smem:[#allocation27_spill]] %s2108_s11 }
   0x8   :  { %2122 = sst [smem:[#allocation28_spill]] %s2109_s12 }
   0x9   :  { %17 = vsyncpa [#allocation3], 0 }
   0xa   :  { %19 = vsyncpa [#allocation3 + $0x1], 0 }
   0xb   :  { %20 = vsyncpa [#allocation6], 0 }
   0xc   :  { %22 = vsyncpa [#allocation6 + $0x1], 0 }
   0xd   :  { %23 = vsyncpa [#allocation9], 0 }
   0xe   :  { %24 = vsyncpa [#allocation12], 0 }
   0xf   :  { %25 = vsyncpa [#allocation4], 0 }
  0x10   :  { %27 = vsyncpa [#allocation4 + $0x1], 0  ;;  %s1706_s21 = smov 0   ;;  %s1708_s22 = smov 0  }
  0x11   :  { %s1710_s23 = smov 0   ;;  %s1712_s24 = smov 0  }
  0x12 LB: > { %s1628_s25 = smov [#allocation7]   ;;  %s1727_s27 = sadd.s32 4294967295, %s1626_s24   ;;  %s1626_s24 = sphi %s1712_s24, %s2156_s24   ;;  %s1622_s23 = sphi %s1710_s23, %s2155_s23   ;;  %s1618_s22 = sphi %s1708_s22, %s2154_s22   ;;  %s1614_s21 = sphi %s1706_s21, %s2153_s21  }
  0x13   : > { %s343_s26 = sshll.u32 %s1628_s25, 4  ;;  %p1131_p0 = scmp.ge.s32.totalorder %s1626_s24, 1  ;;  %s1732_s26 = int_to_ptr.vmem [resolvable:$true] %s343_s26 }
  0x14   : > { %p2111_p1 = scmp.eq.s32.totalorder %s1727_s27, 0  ;;  %p331_p2 = scmp.lt.s32.totalorder %s1626_s24, 3 }
  0x15   : > { %s1629_s29 = smov [#allocation8]   ;;  %s1630_s14 = smov [#allocation10]  }
  0x16   : > { %p1734_p3 = pnand %p1131_p0, %p331_p2  ;;  %s362_s30 = sshll.u32 %s1629_s29, 4  ;;  %s1747_s30 = int_to_ptr.vmem [resolvable:$true] %s362_s30 }
  0x17   : > { %s378_s15 = sshll.u32 %s1630_s14, 4  ;;  %s2125_s3 = sld [smem:[#allocation21_spill]]  ;;  %s1749_s15 = int_to_ptr.vmem [resolvable:$true] %s378_s15 }
  0x18   : > { %s2123_s28 = scalar_select %p1734_p3, 1, 0 }
  0x19   : > { %p1295_p5 = pneg %p1734_p3 }
  0x1b   : > { %p1743_p6 = pnand %p1295_p5, %p2111_p1 }
  0x1d   : > { %s1372_s18 = scalar_lea.hbm %s2125_s3, 512  ;;  %p1759_p8 = pneg %p1743_p6 }
  0x1e   : > { %p1373_p7 = scmp.ne.s32.totalorder %s2125_s3, %s1372_s18  ;;  %p1379_p11 = scmp.lt.u32.totalorder %s1372_s18, %s2125_s3 }
  0x20   : > { %p1375_p9 = pnand %p1759_p8, %p1373_p7 }
  0x22   : > { %p1376_p10 = pneg %p1375_p9 }
  0x24   : > { %p1381_p12 = pnand %p1379_p11, %p1376_p10 }
  0x26   : > { %1384 = shalt.err (!%p1381_p12)
}
  0x27   : > { %s1385_s16 = scalar_lea.vmem %s1732_s26, 512  ;;  %p1393_p5 = scmp.lt.s32.totalorder %s1732_s26, %s1732_s26 }
  0x28   : > { %p1386_p13 = scmp.ne.s32.totalorder %s1732_s26, %s1385_s16  ;;  %p1394_p4 = scmp.lt.s32.totalorder %s1385_s16, %s1385_s16 }
  0x2a   : > { %p1388_p0 = pnand %p1386_p13, %p1759_p8  ;;  %p1395_p7 = por %p1394_p4, %p1393_p5 }
  0x2c   : > { %p1389_p2 = pneg %p1388_p0 }
  0x2e   : > { %p1396_p9 = pnand %p1395_p7, %p1389_p2 }
  0x30   : > { %1399 = shalt.err (!%p1396_p9)
}
  0x31   : > { %s1631_s17 = smov 128   ;;  %s1632_s18 = smov 8  }
  0x32   : > { %1298 = dma.hbm_to_vmem [thread:$0]  (!%p1743_p6), %s2125_s3, 512, %s1732_s26, [#allocation6], %s1631_s17, %s1631_s17, %s1632_s18  }
  0x33   : > { %s2127_s6 = sld [smem:[#allocation22_spill]] }
  0x39   : > { %s1400_s16 = scalar_lea.hbm %s2127_s6, 512 }
  0x3a   : > { %p1401_p4 = scmp.ne.s32.totalorder %s2127_s6, %s1400_s16  ;;  %p1407_p12 = scmp.lt.u32.totalorder %s1400_s16, %s2127_s6 }
  0x3c   : > { %p1403_p10 = pnand %p1401_p4, %p1759_p8 }
  0x3e   : > { %p1404_p11 = pneg %p1403_p10 }
  0x40   : > { %p1409_p13 = pnand %p1407_p12, %p1404_p11 }
  0x42   : > { %1412 = shalt.err (!%p1409_p13)
}
  0x43   : > { %s1413_s26 = scalar_lea.vmem %s1747_s30, 512  ;;  %p1421_p7 = scmp.lt.s32.totalorder %s1747_s30, %s1747_s30 }
  0x44   : > { %p1414_p0 = scmp.ne.s32.totalorder %s1747_s30, %s1413_s26  ;;  %p1422_p9 = scmp.lt.s32.totalorder %s1413_s26, %s1413_s26 }
  0x46   : > { %p1416_p2 = pnand %p1414_p0, %p1759_p8  ;;  %p1423_p4 = por %p1422_p9, %p1421_p7 }
  0x48   : > { %p1417_p5 = pneg %p1416_p2 }
  0x4a   : > { %p1424_p10 = pnand %p1423_p4, %p1417_p5 }
  0x4c   : > { %1427 = shalt.err (!%p1424_p10)
}
  0x4d   : > { %1301 = dma.hbm_to_vmem [thread:$0]  (!%p1743_p6), %s2127_s6, 512, %s1747_s30, [#allocation9], %s1631_s17, %s1631_s17, %s1632_s18  }
  0x4e   : > { %s2128_s8 = sld [smem:[#allocation24_spill]] }
  0x54   : > { %s1428_s19 = scalar_lea.hbm %s2128_s8, 512 }
  0x55   : > { %p1429_p11 = scmp.ne.s32.totalorder %s2128_s8, %s1428_s19  ;;  %p1435_p0 = scmp.lt.u32.totalorder %s1428_s19, %s2128_s8 }
  0x57   : > { %p1431_p12 = pnand %p1429_p11, %p1759_p8 }
  0x59   : > { %p1432_p13 = pneg %p1431_p12 }
  0x5b   : > { %p1437_p2 = pnand %p1435_p0, %p1432_p13 }
  0x5d   : > { %1440 = shalt.err (!%p1437_p2)
}
  0x5e   : > { %s1441_s30 = scalar_lea.vmem %s1749_s15, 512  ;;  %p1449_p4 = scmp.lt.s32.totalorder %s1749_s15, %s1749_s15 }
  0x5f   : > { %p1442_p5 = scmp.ne.s32.totalorder %s1749_s15, %s1441_s30  ;;  %p1450_p10 = scmp.lt.s32.totalorder %s1441_s30, %s1441_s30 }
  0x61   : > { %p1444_p7 = pnand %p1442_p5, %p1759_p8  ;;  %p1451_p11 = por %p1450_p10, %p1449_p4 }
  0x63   : > { %p1445_p9 = pneg %p1444_p7 }
  0x65   : > { %p1452_p12 = pnand %p1451_p11, %p1445_p9 }
  0x67   : > { %1455 = shalt.err (!%p1452_p12)
}
  0x68   : > { %1304 = dma.hbm_to_vmem [thread:$0]  (!%p1743_p6), %s2128_s8, 512, %s1749_s15, [#allocation9], %s1631_s17, %s1631_s17, %s1632_s18  }
  0x69   : > { %s1633_s9 = smov [#allocation11]   ;;  %s2129_s10 = sld [smem:[#allocation26_spill]] }
  0x6a   : > { %s394_s11 = sshll.u32 %s1633_s9, 4  ;;  %s395_s11 = int_to_ptr.vmem [resolvable:$true] %s394_s11 }
  0x6f   : > { %s1456_s20 = scalar_lea.hbm %s2129_s10, 512 }
  0x70   : > { %p1457_p13 = scmp.ne.s32.totalorder %s2129_s10, %s1456_s20  ;;  %p1463_p5 = scmp.lt.u32.totalorder %s1456_s20, %s2129_s10 }
  0x72   : > { %p1459_p0 = pnand %p1457_p13, %p1759_p8 }
  0x74   : > { %p1460_p2 = pneg %p1459_p0 }
  0x76   : > { %p1465_p7 = pnand %p1463_p5, %p1460_p2 }
  0x78   : > { %1468 = shalt.err (!%p1465_p7)
}
  0x79   : > { %s1469_s15 = scalar_lea.vmem %s395_s11, 512  ;;  %p1477_p11 = scmp.lt.s32.totalorder %s395_s11, %s395_s11 }
  0x7a   : > { %p1470_p9 = scmp.ne.s32.totalorder %s395_s11, %s1469_s15  ;;  %p1478_p12 = scmp.lt.s32.totalorder %s1469_s15, %s1469_s15 }
  0x7c   : > { %p1472_p4 = pnand %p1470_p9, %p1759_p8  ;;  %p1479_p1 = por %p1478_p12, %p1477_p11 }
  0x7e   : > { %p1473_p10 = pneg %p1472_p4 }
  0x80   : > { %p1480_p3 = pnand %p1479_p1, %p1473_p10 }
  0x82   : > { %1483 = shalt.err (!%p1480_p3)
}
  0x83   : > { %1307 = dma.hbm_to_vmem [thread:$0]  (!%p1743_p6), %s2129_s10, 512, %s395_s11, [#allocation12], %s1631_s17, %s1631_s17, %s1632_s18  }
  0x84   : > { %s1130_s13 = sadd.s32 4294967294, %s1626_s24   ;;  %s1858_s25 = sadd.s32 1, %s1626_s24  }
  0x85   : > { %s37_s9 = ssub.s32 %s1626_s24, %s1858_s25  ;;  %s40_s12 = sadd.s32 1, %s1622_s23 }
  0x86   : > { %p38_p1 = scmp.eq.s32.totalorder %s37_s9, 0  ;;  %p47_p3 = scmp.ne.s32.totalorder %s1622_s23, %s1618_s22 }
  0x87   : > { %p48_p8 = scmp.eq.s32.totalorder %s1626_s24, 0  ;;  %p53_p13 = scmp.ne.s32.totalorder %s1618_s22, %s1614_s21 }
  0x88   : > { %s1869_s19 = scalar_select %p38_p1, %s1622_s23, %s40_s12  }
  0x89   : > { %p1871_p0 = por %p48_p8, %p47_p3  ;;  %p2132_p2 = scmp.eq.s32.totalorder %s1727_s27, 0 }
  0x8a   : > { %2130 = sst [smem:[#allocation20_spill]] %s1869_s19  ;;  %p318_p5 = scmp.eq.s32.totalorder %s1727_s27, 1 }
  0x8b   : > { %p1877_p6 = por %p2132_p2, %p53_p13  ;;  %p324_p7 = scmp.eq.s32.totalorder %s1130_s13, 1 }
  0x8c   : > { %p1323_p9 = scmp.lt.s32.totalorder %s1626_s24, 2  ;;  %s411_s18 = sand.u32 1, %s1622_s23  }
  0x8d   : > { %s2133_s17 = scalar_select %p1877_p6, 1, 0 }
  0x8e   : > { %p1884_p4 = por %p318_p5, %p47_p3  ;;  %p1888_p10 = por %p324_p7, %p53_p13 }
  0x8f   : > { %s1892_s14 = sshll.u32 %s411_s18, 3  ;;  %s1138_s16 = sshll.u32 %s1626_s24, 7 }
  0x90   : > { %s2134_s11 = scalar_select %p1884_p4, 1, 0 }
  0x91   : > { %s2135_s29 = scalar_select %p1888_p10, 1, 0 }
  0x92   : > { %s1898_s26 = scalar_lea.hbm %s2097_s0, %s1138_s16  ;;  %s415_s7 = scalar_lea.vmem [#allocation2], %s1892_s14 }
  0x93   : > { %s422_s13 = sshll.u32 %s415_s7, 4  ;;  %p1905_p11 = pnand %p1323_p9, %p1871_p0  ;;  %s1901_s13 = int_to_ptr.vmem [resolvable:$true] %s422_s13 }
  0x94   : > { %s1912_s30 = scalar_lea.hbm %s2098_s1, %s1138_s16  ;;  %s429_s15 = sand.u32 1, %s1626_s24  }
  0x95   : > { %s412_s6 = scalar_lea.sflag [#allocation3], %s411_s18  ;;  %s1484_s8 = scalar_lea.hbm %s1898_s26, 128 }
  0x96   : > { %p1485_p12 = scmp.ne.s32.totalorder %s1898_s26, %s1484_s8  ;;  %p1486_p1 = pneg %p1905_p11 }
  0x97   : > { %s1489_s10 = scalar_lea.hbm %s2097_s0, 256  ;;  %p1490_p13 = scmp.lt.u32.totalorder %s1898_s26, %s2097_s0 }
  0x98   : > { %p1487_p3 = pnand %p1486_p1, %p1485_p12  ;;  %p1491_p0 = scmp.lt.u32.totalorder %s1489_s10, %s1484_s8 }
  0x99   : > { %p1493_p5 = scmp.lt.u32.totalorder %s1484_s8, %s1898_s26 }
  0x9a   : > { %p1488_p8 = pneg %p1487_p3  ;;  %p1492_p2 = por %p1491_p0, %p1490_p13 }
  0x9c   : > { %p1494_p7 = por %p1493_p5, %p1492_p2 }
  0x9e   : > { %p1495_p9 = pnand %p1494_p7, %p1488_p8 }
  0xa0   : > { %1498 = shalt.err (!%p1495_p9)
}
  0xa1   : > { %s1499_s18 = scalar_lea.vmem %s1901_s13, 128  ;;  %s1634_s16 = smov [#allocation2]  }
  0xa2   : > { %p1500_p12 = scmp.ne.s32.totalorder %s1901_s13, %s1499_s18  ;;  %s1504_s12 = sshll.u32 %s1634_s16, 4  ;;  %s1505_s12 = int_to_ptr.vmem [resolvable:$false] %s1504_s12 }
  0xa3   : > { %s1506_s19 = scalar_lea.vmem %s1505_s12, 256  ;;  %p1507_p4 = scmp.lt.s32.totalorder %s1901_s13, %s1505_s12 }
  0xa4   : > { %p1502_p3 = pnand %p1500_p12, %p1486_p1  ;;  %p1508_p13 = scmp.lt.s32.totalorder %s1506_s19, %s1499_s18 }
  0xa6   : > { %p1503_p10 = pneg %p1502_p3  ;;  %p1509_p0 = por %p1508_p13, %p1507_p4 }
  0xa8   : > { %p1510_p2 = pnand %p1509_p0, %p1503_p10 }
  0xaa   : > { %1513 = shalt.err (!%p1510_p2)
}
  0xab   : > { %1311 = dma.hbm_to_vmem [thread:$0]  (!%p1905_p11), %s1898_s26, 128, %s1901_s13, %s412_s6  }
  0xac   : > { %s433_s8 = scalar_lea.vmem [#allocation5], %s1892_s14  ;;  %s430_s20 = scalar_lea.sflag [#allocation6], %s429_s15 }
  0xad   : > { %s440_s10 = sshll.u32 %s433_s8, 4  ;;  %s1514_s7 = scalar_lea.hbm %s1912_s30, 128  ;;  %s441_s10 = int_to_ptr.vmem [resolvable:$true] %s440_s10 }
  0xae   : > { %p1515_p4 = scmp.ne.s32.totalorder %s1912_s30, %s1514_s7  ;;  %s1519_s16 = scalar_lea.hbm %s2098_s1, 256 }
  0xaf   : > { %p1520_p5 = scmp.lt.u32.totalorder %s1912_s30, %s2098_s1  ;;  %p1521_p7 = scmp.lt.u32.totalorder %s1519_s16, %s1514_s7 }
  0xb0   : > { %p1517_p10 = pnand %p1515_p4, %p1486_p1  ;;  %p1523_p12 = scmp.lt.u32.totalorder %s1514_s7, %s1912_s30 }
  0xb1   : > { %p1522_p9 = por %p1521_p7, %p1520_p5 }
  0xb2   : > { %p1518_p8 = pneg %p1517_p10 }
  0xb3   : > { %p1524_p3 = por %p1523_p12, %p1522_p9 }
  0xb5   : > { %p1525_p13 = pnand %p1524_p3, %p1518_p8 }
  0xb7   : > { %1528 = shalt.err (!%p1525_p13)
}
  0xb8   : > { %s1529_s6 = scalar_lea.vmem %s441_s10, 128  ;;  %s1635_s14 = smov [#allocation5]  }
  0xb9   : > { %p1530_p0 = scmp.ne.s32.totalorder %s441_s10, %s1529_s6  ;;  %s1534_s26 = sshll.u32 %s1635_s14, 4  ;;  %s1535_s26 = int_to_ptr.vmem [resolvable:$false] %s1534_s26 }
  0xba   : > { %s1536_s13 = scalar_lea.vmem %s1535_s26, 256  ;;  %p1537_p10 = scmp.lt.s32.totalorder %s441_s10, %s1535_s26 }
  0xbb   : > { %p1532_p2 = pnand %p1530_p0, %p1486_p1  ;;  %p1538_p6 = scmp.lt.s32.totalorder %s1536_s13, %s1529_s6 }
  0xbd   : > { %p1533_p4 = pneg %p1532_p2  ;;  %p1539_p5 = por %p1538_p6, %p1537_p10 }
  0xbf   : > { %p1540_p7 = pnand %p1539_p5, %p1533_p4 }
  0xc1   : > { %1543 = shalt.err (!%p1540_p7)
}
  0xc2   : > { %1314 = dma.hbm_to_vmem [thread:$0]  (!%p1905_p11), %s1912_s30, 128, %s441_s10, %s430_s20  }
  0xc3   : > { %p2137_p8 = scmp.ne.s32.totalorder %s2123_s28, 0 }
  0xc4   : > { %s1965_s15 = sand.u32 (!%p2137_p8), 1, %s1618_s22   ;;  %p2138_p6 = scmp.ne.s32.totalorder (!%p2137_p8), %s2133_s17, 0 }
  0xc5   : > { %456 = sbr.rel (%p2137_p8) target bundleno = 1239 (0x4d7), region = 68  ;;  %s1968_s8 = sshll.u32 (!%p2137_p8), %s1965_s15, 3 }
  0xc6   : > { %s459_s7 = scalar_lea.sflag (!%p2137_p8), [#allocation3], %s1965_s15  ;;  %s462_s3 = scalar_lea.vmem (!%p2137_p8), [#allocation2], %s1968_s8 }
  0xcc   : > { %1589 = dma.done.wait (%p2138_p6), %s459_s7, 128  }
  0xcd   : > { %1591 = vsyncadd (%p2138_p6), %s459_s7, 4294967168  ;;  %s467_s28 = sand.u32 1, %s1727_s27   ;;  %s471_s30 = scalar_lea.vmem [#allocation5], %s1968_s8 }
  0xce   : > { %s468_s9 = scalar_lea.sflag [#allocation6], %s467_s28 }
  0xcf   : > { %1593 = dma.done.wait (%p2138_p6), %s468_s9, 128  }
  0xd0   : > { %1595 = vsyncadd (%p2138_p6), %s468_s9, 4294967168  ;;  %p2139_p11 = scmp.eq.s32.totalorder %s1727_s27, 0 }
  0xd2   : > { %1597 = dma.done.wait (%p2139_p11), [#allocation6], 512   ;;  %p2140_p1 = pmov %p2139_p11 }
  0xd4   : > { %1599 = vsyncadd (%p2140_p1), [#allocation6], 4294966784  ;;  %p2141_p9 = pmov %p2140_p1 }
  0xd5   : > { %p2142_p12 = pmov %p2140_p1 }
  0xd6   : > { %1601 = dma.done.wait (%p2141_p9), [#allocation9], 1024  }
  0xd7   : > { %1603 = vsyncadd (%p2142_p12), [#allocation9], 4294966272  ;;  %p2143_p3 = pmov %p2140_p1 }
  0xd8   : > { %p2144_p13 = pmov %p2140_p1 }
  0xd9   : > { %1605 = dma.done.wait (%p2143_p3), [#allocation12], 512  }
  0xda   : > { %1607 = vsyncadd (%p2144_p13), [#allocation12], 4294966784  ;;  %p537_p0 = scmp.lt.s32.totalorder %s1727_s27, 1  ;;  %v1636_v0 = vmov 0   ;;  %v1637_v1 = vmov 0.0|0.0   ;;  %v555_v3 = vld [vmem:[%s2101_s4] sm:$0xff] }
  0xdb   : > { %1371 = vset.pattern.permute.xlu0 %v1636_v0  ;;  %1243 = vmatprep.subr.bf16.mxu0 %v1637_v1  ;;  %v556_v4 = vld [vmem:[%s2101_s4 + $0x8] sm:$0xff]  ;;  %v551_v6 = vld [vmem:[#allocation7] sm:$0xff]  ;;  %v557_v8 = vld [vmem:[%s2101_s4 + $0x10] sm:$0xff]  ;;  %vm1638_vm0 = vmmov 0   ;;  %v1639_v13 = vmov 0.0   ;;  %vm559_vm1 = vcmask 261120  }
  0xdc   : > { %s538_s17 = scalar_select %p537_p0, %s1727_s27, 1  ;;  %1249 = vmatprep.subr.bf16.mxu1 %v1637_v1  ;;  %v1244_v5 = vpack.c.bf16 %v556_v4, %v555_v3  ;;  %v552_v7 = vld [vmem:[#allocation7 + $0x8] sm:$0xff]  ;;  %v558_v10 = vld [vmem:[%s2101_s4 + $0x18] sm:$0xff]  ;;  %v553_v11 = vld [vmem:[#allocation7 + $0x10] sm:$0xff]  ;;  %1196 = vmatprep.mubr.msk.f32.mxu0 %vm1638_vm0, %v1639_v13 }
  0xdd   : > { %v1250_v9 = vpack.c.bf16 %v552_v7, %v551_v6  ;;  %v554_v12 = vld [vmem:[#allocation7 + $0x18] sm:$0xff]  ;;  %1207 = vmatprep.mubr.msk.f32.mxu1 %vm1638_vm0, %v1639_v13  ;;  %v1247_v14 = vpack.c.bf16 %v558_v10, %v557_v8  ;;  %v542_v16 = vld [vmem:[%s462_s3] sm:$0xff]  ;;  %v717_v24 = vld [vmem:[#allocation8 + $0x10] sm:$0xff]  ;;  %s2147_s6 = sld [smem:[#allocation27_spill]]  ;;  %s1160_s14 = sshll.u32 %s1727_s27, 7 }
  0xde   : > { %s1149_s10 = sshll.u32 %s538_s17, 3  ;;  %1245 = vmatpush3.bf16.msra.mxu0 %v1244_v5  ;;  %v1253_v15 = vpack.c.bf16 %v554_v12, %v553_v11  ;;  %v549_v17 = vld [vmem:[%s471_s30] sm:$0xff]  ;;  %v715_v21 = vld [vmem:[#allocation8] sm:$0xff]  ;;  %v716_v22 = vld [vmem:[#allocation8 + $0x8] sm:$0xff]  ;;  %s536_s26 = scalar_lea.vmem [#allocation13], %s1968_s8 }
  0xdf   : > { %s540_s16 = scalar_lea.vmem %s2099_s2, %s1149_s10  ;;  %1251 = vmatpush3.bf16.msra.mxu1 %v1250_v9  ;;  %1246 = vmatprep.subr.bf16.mxu0 %v1637_v1  ;;  %v1256_v23 = vpack.c.bf16 %v716_v22, %v715_v21  ;;  %v718_v25 = vld [vmem:[#allocation8 + $0x18] sm:$0xff]  ;;  %v800_v27 = vld [vmem:[#allocation10] sm:$0xff]  ;;  %v801_v28 = vld [vmem:[#allocation10 + $0x8] sm:$0xff]  ;;  %s2145_s10 = sld [smem:[#allocation23_spill]] }
  0xe0   : > { %v541_v2 = vld [vmem:[%s540_s16] sm:$0xff]  ;;  %1252 = vmatprep.subr.bf16.mxu1 %v1637_v1  ;;  %v1259_v26 = vpack.c.bf16 %v718_v25, %v717_v24  ;;  %v1262_v29 = vpack.c.bf16 %v801_v28, %v800_v27  ;;  %v802_v38 = vld [vmem:[#allocation10 + $0x10] sm:$0xff]  ;;  %v803_v39 = vld [vmem:[#allocation10 + $0x18] sm:$0xff]  ;;  %s2146_s16 = sld [smem:[#allocation25_spill]]  ;;  %s987_s13 = sshll.u32 %s536_s26, 4  ;;  %s2054_s13 = int_to_ptr.vmem [resolvable:$true] %s987_s13 }
  0xe1   : > { %545 = vperm.xlu0 %1371, %v541_v2   ;;  %v1152_v32 = vld [vmem:[%s2102_s5] ss:$0 sm:$0xff]  ;;  %v1265_v40 = vpack.c.bf16 %v803_v39, %v802_v38  ;;  %v886_v42 = vld [vmem:[#allocation11 + $0x8] sm:$0xff]  ;;  %v887_v49 = vld [vmem:[#allocation11 + $0x10] sm:$0xff]  ;;  %s2148_s3 = sld [smem:[#allocation28_spill]]  ;;  %s974_s30 = scalar_lea.sflag [#allocation4], %s1965_s15 }
  0xe2   : > { %1248 = vmatpush3.bf16.msra.mxu0 %v1247_v14  ;;  %v885_v41 = vld [vmem:[#allocation11] sm:$0xff]  ;;  %v888_v50 = vld [vmem:[#allocation11 + $0x18] sm:$0xff]  ;;  %s1544_s17 = scalar_lea.vmem %s2054_s13, 128  ;;  %p2149_p4 = scmp.ne.s32.totalorder %s2134_s11, 0 }
  0xe3   : > { %1254 = vmatpush3.bf16.msra.mxu1 %v1253_v15  ;;  %1255 = vmatprep.subr.bf16.mxu0 %v1637_v1  ;;  %v1268_v43 = vpack.c.bf16 %v886_v42, %v885_v41  ;;  %v1271_v51 = vpack.c.bf16 %v888_v50, %v887_v49  ;;  %v1157_v57 = vld [vmem:[%s2147_s6] ss:$0 sm:$0xff]  ;;  %p1545_p2 = scmp.ne.s32.totalorder %s2054_s13, %s1544_s17  ;;  %s1640_s27 = smov [#allocation13]  }
  0xe4   : > { %1261 = vmatprep.subr.bf16.mxu1 %v1637_v1  ;;  %s1548_s8 = sshll.u32 %s1640_s27, 4  ;;  %s1549_s8 = int_to_ptr.vmem [resolvable:$false] %s1548_s8 }
  0xe5   : > { %v1153_v44 = vld [vmem:[%s2145_s10] ss:$0 sm:$0xff]  ;;  %p1546_p10 = pnand %p1545_p2, %p2149_p4  ;;  %s1550_s10 = scalar_lea.vmem %s1549_s8, 256 }
  0xe6   : > { %v1155_v52 = vld [vmem:[%s2146_s16] ss:$0 sm:$0xff]  ;;  %p1551_p7 = scmp.lt.s32.totalorder %s2054_s13, %s1549_s8  ;;  %p1552_p8 = scmp.lt.s32.totalorder %s1550_s10, %s1544_s17 }
  0xe7   : > { %s2052_s9 = scalar_lea.hbm %s2148_s3, %s1160_s14  ;;  %p1547_p5 = pneg %p1546_p10 }
  0xe8   : > { %p1553_p6 = por %p1552_p8, %p1551_p7 }
  0xea   : > { %p1554_p11 = pnand %p1553_p6, %p1547_p5 }
 0x160   : > { %v546_v18 = vpop.permute.xlu0 %545 }
 0x161   : > { %v548_v19 = vmul.f32 %v546_v18, %v542_v16  ;;  %v550_v20 = vmul.f32 %v549_v17, %v546_v18 }
 0x163   : > { %1197 = vmatmul.mubr.msk.f32.vlgmr.msra.gmra.mrb[0].mxu0 %vm559_vm1, %v550_v20  ;;  %1208 = vmatmul.mubr.msk.f32.vlgmr.msra.gmra.mrb[0].mxu1 %vm559_vm1, %v548_v19 }
 0x164   : > { %1218 = vmatprep.mubr.msk.f32.mxu0 %vm1638_vm0, %v1639_v13  ;;  %1229 = vmatprep.mubr.msk.f32.mxu1 %vm1638_vm0, %v1639_v13 }
 0x165   : > { %1257 = vmatpush3.bf16.msra.mxu0 %v1256_v23  ;;  %1263 = vmatpush3.bf16.msra.mxu1 %v1262_v29 }
 0x166   : > { %1258 = vmatprep.subr.bf16.mxu0 %v1637_v1  ;;  %1264 = vmatprep.subr.bf16.mxu1 %v1637_v1 }
 0x169   : > { %1260 = vmatpush3.bf16.msra.mxu0 %v1259_v26  ;;  %1266 = vmatpush3.bf16.msra.mxu1 %v1265_v40 }
 0x16a   : > { %1267 = vmatprep.subr.bf16.mxu0 %v1637_v1 }
 0x236   : > { %v629_v30 = vpop.f32.mrb[0].mxu0  ;;  %v702_v31 = vpop.f32.mrb[0].mxu1 }
 0x237   : > { %v703_v33 = vadd.f32 %v702_v31, %v629_v30  ;;  %v1198_v34 = vpop.f32.mrb[1].mxu0  ;;  %v1209_v35 = vpop.f32.mrb[1].mxu1 }
 0x239   : > { %v713_v36 = vadd.f32 %v1152_v32, %v703_v33 }
 0x23b   : > { %v714_v37 = vmax.f32 %v713_v36, 0.0 }
 0x23d   : > { %1219 = vmatmul.mubr.msk.f32.vlgmr.msra.gmra.mrb[2].mxu0 %vm559_vm1, %v714_v37 }
 0x23e   : > { %1240 = vmatprep.mubr.msk.f32.mxu0 %vm1638_vm0, %v1639_v13  ;;  %1269 = vmatpush3.bf16.msra.mxu0 %v1268_v43 }
 0x23f   : > { %1270 = vmatprep.subr.bf16.mxu0 %v1637_v1 }
 0x242   : > { %1272 = vmatpush3.bf16.msra.mxu0 %v1271_v51 }
 0x310   : > { %v795_v45 = vpop.f32.mrb[2].mxu0 }
 0x311   : > { %v796_v46 = vadd.f32 %v1153_v44, %v795_v45  ;;  %v1220_v47 = vpop.f32.mrb[3].mxu0 }
 0x313   : > { %v799_v48 = vmax.f32 %v796_v46, 0.0 }
 0x315   : > { %1230 = vmatmul.mubr.msk.f32.vlgmr.msra.gmra.mrb[2].mxu1 %vm559_vm1, %v799_v48 }
 0x3e8   : > { %v880_v53 = vpop.f32.mrb[2].mxu1 }
 0x3e9   : > { %v881_v54 = vadd.f32 %v1155_v52, %v880_v53  ;;  %v1231_v55 = vpop.f32.mrb[3].mxu1 }
 0x3eb   : > { %v884_v56 = vmax.f32 %v881_v54, 0.0 }
 0x3ed   : > { %1241 = vmatmul.mubr.msk.f32.vlgmr.msra.gmra.mrb[4].mxu0 %vm559_vm1, %v884_v56 }
 0x4c0   : > { %v965_v58 = vpop.f32.mrb[4].mxu0 }
 0x4c1   : > { %v966_v59 = vadd.f32 %v1157_v57, %v965_v58  ;;  %v1242_v60 = vpop.f32.mrb[5].mxu0 }
 0x4c3   : > { %v969_v61 = vadd.f32 1.0, %v966_v59 }
 0x4c5   : > { %v970_v62 = vmax.f32 %v969_v61, 0.05 }
 0x4c7   : > { %v971_v63 = vmin.f32 %v970_v62, 1e+09 }
 0x4c9   : > { %972 = vst.msk [vmem:[%s536_s26] sm:$0xff] %vm559_vm1, %v971_v63 }
 0x4ca   : > { %1557 = shalt.err (!%p1554_p11)
}
 0x4cb   : > { %s1558_s15 = scalar_lea.hbm %s2052_s9, 128  ;;  %s1562_s16 = scalar_lea.hbm %s2148_s3, 256 }
 0x4cc   : > { %p1559_p1 = scmp.ne.s32.totalorder %s2052_s9, %s1558_s15  ;;  %p1563_p3 = scmp.lt.u32.totalorder %s2052_s9, %s2148_s3 }
 0x4cd   : > { %p1564_p13 = scmp.lt.u32.totalorder %s1562_s16, %s1558_s15  ;;  %p1566_p2 = scmp.lt.u32.totalorder %s1558_s15, %s2052_s9 }
 0x4ce   : > { %p1560_p9 = pnand %p1559_p1, %p2149_p4 }
 0x4cf   : > { %p1565_p0 = por %p1564_p13, %p1563_p3 }
 0x4d0   : > { %p1561_p12 = pneg %p1560_p9 }
 0x4d1   : > { %p1567_p10 = por %p1566_p2, %p1565_p0 }
 0x4d3   : > { %p1568_p5 = pnand %p1567_p10, %p1561_p12 }
 0x4d5   : > { %1571 = shalt.err (!%p1568_p5)
}
 0x4d6   : > { %1293 = dma.vmem_to_hbm [thread:$0]  (%p2149_p4), %s2054_s13, 128, %s2052_s9, %s974_s30  }
 0x4d7 PF: > { %s999_s6 = sand.u32 1, %s1614_s21   ;;  %p2150_p7 = scmp.ne.s32.totalorder %s2135_s29, 0 }
 0x4d8   : > { %p2151_p8 = scmp.ge.s32.totalorder %s1626_s24, 2  ;;  %s1000_s14 = scalar_lea.sflag [#allocation4], %s999_s6 }
 0x4da   : > { %p1316_p6 = pnand %p2151_p8, %p2150_p7 }
 0x4dc   : > { %1609 = dma.done.wait (!%p1316_p6), %s1000_s14, 128  }
 0x4dd   : > { %1611 = vsyncadd (!%p1316_p6), %s1000_s14, 4294967168  ;;  %s2152_s26 = sld [smem:[#allocation20_spill]]  ;;  %p30_p11 = scmp.ge.s32.totalorder %s1858_s25, 4  }
 0x4de   : > { %s2153_s21 = smov %s1618_s22  ;;  %s2154_s22 = smov %s1622_s23 }
 0x4df   : > { %s2156_s24 = smov %s1858_s25  ;;  %32 = sbr.rel (!%p30_p11) target bundleno = 18 (0x12), region = 145 }
 0x4e3   : > { %s2155_s23 = smov %s2152_s26 }
 0x4e6   :  { %1005 = vsyncpa [#allocation3], 1 }
 0x4e7   :  { %1007 = vsyncpa [#allocation3 + $0x1], 1 }
 0x4e8   :  { %1008 = vsyncpa [#allocation6], 1 }
 0x4e9   :  { %1010 = vsyncpa [#allocation6 + $0x1], 1 }
 0x4ea   :  { %1011 = vsyncpa [#allocation9], 1 }
 0x4eb   :  { %1012 = vsyncpa [#allocation12], 1 }
 0x4ec   :  { %1013 = vsyncpa [#allocation4], 1 }
 0x4ed   :  { %1015 = vsyncpa [#allocation4 + $0x1], 1 }

</bundles_post_ra>
